<compile_context>
chip_gen: v6e
topology: v6e:2x2x1
jax: 0.10.0
libtpu: 0.0.40
codegen_flags: <defaults>
</compile_context>

<pallas_src>
import math

import jax
import jax.numpy as jnp
from jax.experimental import pallas as pl
from jax.experimental.pallas import tpu as pltpu


# ----------------------------------------------------------------------------
# Fused Pallas kernel
# ----------------------------------------------------------------------------
def gcn_fused_kernel(xt_ref, lapt_ref, wbd_ref, out_ref, acc_ref):
    """Fused GCN layer (transposed / lane-dense formulation).

    Grid = (j: output lane tile over padded N [parallel],
            k: contraction tile over padded N [arbitrary, innermost]).

    xt_ref:   (B*F_in, Np)       X^T, fully VMEM-resident (bf16)
    lapt_ref: (tk, tn)           tile (k, j) of new_lap^T (bf16)
    wbd_ref:  (B*F_out, B*F_in)  block-diagonal W^T, resident (f32)
    out_ref:  (B*F_out, tn)      output tile j of out^T (f32)
    acc_ref:  (B*F_in, tn)       f32 accumulator for (X^T @ L^T) tile j
    """
    k = pl.program_id(1)
    tk = lapt_ref.shape[0]

    @pl.when(k == 0)
    def _():
        acc_ref[...] = jnp.zeros_like(acc_ref)

    # Slice the resident X^T at the k-th contraction window (lane-aligned).
    x_blk = xt_ref[:, pl.ds(pl.multiple_of(k * tk, 128), tk)]
    # (X^T @ L_new^T) accumulated in f32 over the contraction (k) tiles.
    acc_ref[...] += jnp.dot(x_blk, lapt_ref[...], preferred_element_type=jnp.float32)

    @pl.when(k == pl.num_programs(1) - 1)
    def _():
        # Dense layer + tanh epilogue, written once per lane tile (lane-dense).
        out_ref[...] = jnp.tanh(
            jnp.dot(wbd_ref[...], acc_ref[...], preferred_element_type=jnp.float32)
        ).astype(out_ref.dtype)


# ----------------------------------------------------------------------------
# Wrapper (parameter prep + layout plumbing in plain JAX)
# ----------------------------------------------------------------------------
def _round_up(x, m):
    return ((x + m - 1) // m) * m


def _vmem_capacity_bytes():
    try:
        return int(pltpu.get_tpu_info().vmem_capacity_bytes)
    except Exception:
        return 64 * 1024 * 1024  # conservative default (v7x per-TC VMEM)


def gcn_layer_forward(inputs, laplacian, alpha_matrix, weights, *, use_bf16=True):
    # inputs: (B, N, F_in)
    B, N, F_in = inputs.shape
    F_out = weights.shape[1]

    # ---- generation-dependent tiling / VMEM budget --------------------------
    vmem_cap = _vmem_capacity_bytes()
    if vmem_cap >= 128 * 1024 * 1024:        # v5e / v6e: 128 MiB physical VMEM
        tile_target = 2048
        vmem_limit = 96 * 1024 * 1024
    else:                                    # v7x: 64 MiB per TensorCore
        tile_target = 1024
        vmem_limit = 48 * 1024 * 1024

    # Pad N so the lane axis is 128-aligned and evenly tiled by tn/tk.
    np_min = _round_up(N, 128)
    tn = min(tile_target, np_min)
    Np = _round_up(N, tn)
    # Megacore guard (v7x): keep >= 2 programs on the "parallel" j axis
    # whenever the problem is big enough to split across two TensorCores.
    if Np // tn < 2 and Np >= 256:
        tn = _round_up(Np // 2, 128)
        Np = _round_up(N, tn)
    tk = tn
    grid_j = Np // tn
    grid_k = Np // tk
    pad = Np - N

    in_dtype = jnp.bfloat16 if use_bf16 else jnp.float32

    # ---- parameter-only prep (input-independent, hoisted out of the kernel) -
    # PyTorch: new_laplacian = laplacian + alpha_matrix * eye(N)
    new_lap = laplacian + jnp.diag(jnp.diagonal(alpha_matrix))
    lap_t = jnp.pad(new_lap.T, ((0, pad), (0, pad))).astype(in_dtype)     # (Np, Np)
    # Block-diagonal W^T: per-batch dense layer becomes a single matmul.
    # NOTE: at B=2 this is negligible; for large B replace with a batch grid
    # axis (Squeezed leading dim) to avoid the O(B^2) epilogue cost.
    wbd = jnp.kron(jnp.eye(B, dtype=jnp.float32),
                   weights.T.astype(jnp.float32))                         # (B*F_out, B*F_in)

    # ---- activation layout: N on the lane (last) axis ------------------------
    # X^T where X = inputs.permute(1,0,2).reshape(N, B*F_in)  (PyTorch layout).
    xt = jnp.transpose(inputs, (0, 2, 1)).reshape(B * F_in, N)
    xt = jnp.pad(xt, ((0, 0), (0, pad))).astype(in_dtype)                  # (B*F_in, Np)

    # Extra laplacian buffer only when the contraction pipeline is long enough
    # to benefit (the per-step compute is tiny, so the pipeline is DMA-paced).
    lap_spec_kwargs = {}
    if grid_k >= 3:
        lap_spec_kwargs["pipeline_mode"] = pl.Buffered(3)

    flops = 2 * Np * Np * (B * F_in) + 2 * Np * (B * F_out) * (B * F_in)
    bytes_accessed = (
        Np * Np * jnp.dtype(in_dtype).itemsize            # laplacian stream
        + (B * F_in) * Np * jnp.dtype(in_dtype).itemsize  # X^T (resident)
        + (B * F_out) * (B * F_in) * 4                    # blockdiag(W^T)
        + (B * F_out) * Np * 4                            # output
    )

    out_t = pl.pallas_call(
        gcn_fused_kernel,
        out_shape=jax.ShapeDtypeStruct((B * F_out, Np), jnp.float32),
        grid_spec=pltpu.PrefetchScalarGridSpec(
            num_scalar_prefetch=0,
            grid=(grid_j, grid_k),
            in_specs=[
                # X^T fully resident (constant block index -> fetched once).
                pl.BlockSpec((B * F_in, Np), lambda j, k: (0, 0)),
                # new_lap^T tile (k, j): the dominant HBM stream (bf16).
                pl.BlockSpec((tk, tn), lambda j, k: (k, j), **lap_spec_kwargs),
                # Block-diagonal W^T, resident.
                pl.BlockSpec((B * F_out, B * F_in), lambda j, k: (0, 0)),
            ],
            out_specs=pl.BlockSpec((B * F_out, tn), lambda j, k: (0, j)),
            scratch_shapes=[pltpu.VMEM((B * F_in, tn), jnp.float32)],
        ),
        compiler_params=pltpu.CompilerParams(
            dimension_semantics=("parallel", "arbitrary"),
            vmem_limit_bytes=vmem_limit,
        ),
        cost_estimate=pl.CostEstimate(
            flops=flops,
            transcendentals=(B * F_out) * Np,
            bytes_accessed=bytes_accessed,
        ),
    )(xt, lap_t, wbd)

    # (B*F_out, Np) -> drop lane padding -> (B, N, F_out).
    return out_t[:, :N].reshape(B, F_out, N).transpose(0, 2, 1)


# ----------------------------------------------------------------------------
# Parameter construction (deterministic, mirrors the PyTorch __init__)
# ----------------------------------------------------------------------------
def calculate_laplacian_with_self_loop(matrix):
    matrix = matrix + jnp.eye(matrix.shape[0], dtype=matrix.dtype)
    row_sum = matrix.sum(1)
    d_inv_sqrt = jnp.power(row_sum, -0.5)
    d_inv_sqrt = jnp.where(jnp.isinf(d_inv_sqrt), 0.0, d_inv_sqrt)
    d_mat_inv_sqrt = jnp.diag(d_inv_sqrt)
    return (matrix @ d_mat_inv_sqrt).T @ d_mat_inv_sqrt


def make_params(key, num_nodes, input_dim, output_dim):
    k_adj, k_alpha, k_w = jax.random.split(key, 3)
    a = jax.random.uniform(k_adj, (num_nodes, num_nodes), dtype=jnp.float32)
    adj = (a + a.T) * 0.5
    laplacian = calculate_laplacian_with_self_loop(adj)

    # nn.init.normal_(alpha_matrix, 0.5, 0.5)
    alpha_matrix = 0.5 + 0.5 * jax.random.normal(
        k_alpha, (num_nodes, num_nodes), dtype=jnp.float32
    )

    # nn.init.xavier_uniform_(weights, gain=calculate_gain('tanh'))
    gain = 5.0 / 3.0
    bound = gain * math.sqrt(6.0 / (input_dim + output_dim))
    weights = jax.random.uniform(
        k_w, (input_dim, output_dim), minval=-bound, maxval=bound, dtype=jnp.float32
    )
    return laplacian, alpha_matrix, weights


def reference_forward(inputs, laplacian, alpha_matrix, weights):
    """Pure-JAX f32 reference matching the PyTorch forward exactly."""
    B, N, F_in = inputs.shape
    F_out = weights.shape[1]
    x = jnp.transpose(inputs, (1, 0, 2)).reshape(N, B * F_in)
    new_lap = laplacian + alpha_matrix * jnp.eye(N, dtype=jnp.float32)
    ax = new_lap @ x
    ax = ax.reshape(N * B, F_in)
    out = jnp.tanh(ax @ weights)
    return out.reshape(N, B, F_out).transpose(1, 0, 2)


# ----------------------------------------------------------------------------
if __name__ == "__main__":
    batch = 2
    num_nodes = 8
    input_dim = 4
    output_dim = 16

    key = jax.random.PRNGKey(0)
    k_in, k_params = jax.random.split(key)

    inputs = jax.random.normal(
        k_in, (batch, num_nodes, input_dim), dtype=jnp.float32
    )
    laplacian, alpha_matrix, weights = make_params(
        k_params, num_nodes, input_dim, output_dim
    )

    out = gcn_layer_forward(inputs, laplacian, alpha_matrix, weights)
    out = jax.block_until_ready(out)

    ref = reference_forward(inputs, laplacian, alpha_matrix, weights)
    assert out.shape == (batch, num_nodes, output_dim)
    # bf16 input stream (f32 accumulation / epilogue) -> looser tolerance vs f32 ref.
    assert jnp.allclose(out, ref, atol=3e-2, rtol=3e-2), "mismatch vs JAX reference"

    print("KERNEL_OK")
</pallas_src>

<mosaic_0001>
module attributes {stable_mosaic.version = 11 : i64} {
  func.func @gcn_fused_kernel(%arg0: i32, %arg1: i32, %arg2: memref<8x128xbf16, #tpu.memory_space<vmem>>, %arg3: memref<128x128xbf16, #tpu.memory_space<vmem>>, %arg4: memref<32x8xf32, #tpu.memory_space<vmem>>, %arg5: memref<32x128xf32, #tpu.memory_space<vmem>>, %arg6: memref<8x128xf32, #tpu.memory_space<vmem>>) attributes {dimension_semantics = [#tpu.dimension_semantics<parallel>, #tpu.dimension_semantics<arbitrary>], iteration_bounds = array<i64: 1, 1>, scalar_prefetch = 0 : i64, scratch_operands = 1 : i64, tpu.core_type = #tpu.core_type<tc>, window_params = [{pipeline_mode = #tpu.pipeline_mode<synchronous>, transform_indices = @transform_0, window_bounds = array<i64: 8, 128>}, {transform_indices = @transform_1, window_bounds = array<i64: 128, 128>}, {pipeline_mode = #tpu.pipeline_mode<synchronous>, transform_indices = @transform_2, window_bounds = array<i64: 32, 8>}, {transform_indices = @transform_3, window_bounds = array<i64: 32, 128>}]} {
    %c0_i32 = arith.constant 0 : i32
    %0 = arith.cmpi eq, %arg1, %c0_i32 : i32
    %1 = arith.extui %0 : i1 to i32
    %c0_i32_0 = arith.constant 0 : i32
    %2 = arith.cmpi ne, %1, %c0_i32_0 : i32
    scf.if %2 {
      %cst_9 = arith.constant 0.000000e+00 : f32
      %15 = vector.broadcast %cst_9 : f32 to vector<8x128xf32>
      %c0_10 = arith.constant 0 : index
      %c0_11 = arith.constant 0 : index
      %16 = vector.load %arg6[%c0_10, %c0_11] : memref<8x128xf32, #tpu.memory_space<vmem>>, vector<8x128xf32>
      tpu.vector_store %arg6[%c0_10, %c0_11], %15 {strides = array<i32>} : memref<8x128xf32, #tpu.memory_space<vmem>>, vector<8x128xf32>,
    } else {
    }
    %c128_i32 = arith.constant 128 : i32
    %3 = arith.muli %arg1, %c128_i32 : i32
    %4 = tpu.assume_multiple %3, 128 : i32
    %c0 = arith.constant 0 : index
    %5 = arith.index_cast %4 : i32 to index
    %6 = vector.load %arg2[%c0, %5] : memref<8x128xbf16, #tpu.memory_space<vmem>>, vector<8x128xbf16>
    %c0_1 = arith.constant 0 : index
    %c0_2 = arith.constant 0 : index
    %7 = vector.load %arg6[%c0_1, %c0_2] : memref<8x128xf32, #tpu.memory_space<vmem>>, vector<8x128xf32>
    %c0_3 = arith.constant 0 : index
    %c0_4 = arith.constant 0 : index
    %8 = vector.load %arg3[%c0_3, %c0_4] : memref<128x128xbf16, #tpu.memory_space<vmem>>, vector<128x128xbf16>
    %cst = arith.constant dense<0.000000e+00> : vector<8x128xf32>
    %9 = tpu.matmul %6, %8, %cst {dimension_numbers = #tpu.dot_dimension_numbers<[1], [0], [0], [1], [0, 0, 1, 1], [], []>} : vector<8x128xbf16>, vector<128x128xbf16>, vector<8x128xf32> -> vector<8x128xf32>
    %10 = arith.addf %7, %9 : vector<8x128xf32>
    %c0_5 = arith.constant 0 : index
    %c0_6 = arith.constant 0 : index
    %11 = vector.load %arg6[%c0_5, %c0_6] : memref<8x128xf32, #tpu.memory_space<vmem>>, vector<8x128xf32>
    tpu.vector_store %arg6[%c0_5, %c0_6], %10 {strides = array<i32>} : memref<8x128xf32, #tpu.memory_space<vmem>>, vector<8x128xf32>,
    %c0_i32_7 = arith.constant 0 : i32
    %12 = arith.cmpi eq, %arg1, %c0_i32_7 : i32
    %13 = arith.extui %12 : i1 to i32
    %c0_i32_8 = arith.constant 0 : i32
    %14 = arith.cmpi ne, %13, %c0_i32_8 : i32
    scf.if %14 {
      %c0_9 = arith.constant 0 : index
      %c0_10 = arith.constant 0 : index
      %15 = vector.load %arg4[%c0_9, %c0_10] : memref<32x8xf32, #tpu.memory_space<vmem>>, vector<32x8xf32>
      %c0_11 = arith.constant 0 : index
      %c0_12 = arith.constant 0 : index
      %16 = vector.load %arg6[%c0_11, %c0_12] : memref<8x128xf32, #tpu.memory_space<vmem>>, vector<8x128xf32>
      %cst_13 = arith.constant dense<0.000000e+00> : vector<32x128xf32>
      %17 = tpu.matmul %15, %16, %cst_13 {dimension_numbers = #tpu.dot_dimension_numbers<[1], [0], [0], [1], [0, 0, 1, 1], [], []>} : vector<32x8xf32>, vector<8x128xf32>, vector<32x128xf32> -> vector<32x128xf32>
      %18 = math.tanh %17 : vector<32x128xf32>
      %c0_14 = arith.constant 0 : index
      %c0_15 = arith.constant 0 : index
      %19 = vector.load %arg5[%c0_14, %c0_15] : memref<32x128xf32, #tpu.memory_space<vmem>>, vector<32x128xf32>
      tpu.vector_store %arg5[%c0_14, %c0_15], %18 {strides = array<i32>} : memref<32x128xf32, #tpu.memory_space<vmem>>, vector<32x128xf32>,
    } else {
    }
    return
  }
  func.func @transform_0(%arg0: i32, %arg1: i32) -> (i32, i32) {
    %c0_i32 = arith.constant 0 : i32
    %c0_i32_0 = arith.constant 0 : i32
    %c0_i32_1 = arith.constant 0 : i32
    return %c0_i32, %c0_i32_0 : i32, i32
  }
  func.func @transform_1(%arg0: i32, %arg1: i32) -> (i32, i32) {
    %c0_i32 = arith.constant 0 : i32
    return %arg1, %arg0 : i32, i32
  }
  func.func @transform_2(%arg0: i32, %arg1: i32) -> (i32, i32) {
    %c0_i32 = arith.constant 0 : i32
    %c0_i32_0 = arith.constant 0 : i32
    %c0_i32_1 = arith.constant 0 : i32
    return %c0_i32, %c0_i32_0 : i32, i32
  }
  func.func @transform_3(%arg0: i32, %arg1: i32) -> (i32, i32) {
    %c0_i32 = arith.constant 0 : i32
    %c0_i32_0 = arith.constant 0 : i32
    return %c0_i32, %arg0 : i32, i32
  }
}

</mosaic_0001>

<bundles_post_ra>
// kernel: tpu_custom_call.1
= control target key start
LH: loop header
LB: loop body
LE: loop exit
PB: predicated region body
PF: predicated region fallthrough
CT: control target
= control target key end

     0   :  { %8 = vsyncpa [#allocation4], 0  ;;  %s452_s0 = inlined_call_operand.vmem [shape: bf16[8,128], index: 0, kind: input, shape index: {}]   ;;  %s453_s1 = inlined_call_operand.hbm [shape: bf16[128,128], index: 1, kind: input, shape index: {}]   ;;  %s454_s2 = inlined_call_operand.vmem [shape: f32[32,8], index: 2, kind: input, shape index: {}]   ;;  %s455_s3 = inlined_call_operand.hbm [shape: f32[32,128], index: 3, kind: output, shape index: {}]  }
   0x1   :  { %9 = vsyncpa [#allocation5], 0  ;;  %s403_s12 = smov [#allocation3]  }
   0x2   :  { %s17_s13 = sshll.u32 %s403_s12, 4  ;;  %s18_s13 = int_to_ptr.vmem [resolvable:$true] %s17_s13 }
   0x3   :  { %s367_s14 = scalar_lea.vmem %s18_s13, 1024  ;;  %p372_p1 = scmp.lt.s32.totalorder %s18_s13, %s18_s13 }
   0x4   :  { %p368_p0 = scmp.ne.s32.totalorder %s18_s13, %s367_s14  ;;  %p373_p2 = scmp.lt.s32.totalorder %s367_s14, %s367_s14 }
   0x6   :  { %p374_p3 = por %p373_p2, %p372_p1 }
   0x8   :  { %p375_p4 = pnand %p374_p3, %p368_p0 }
   0xa   :  { %378 = shalt.err (!%p375_p4)
}
   0xb   :  { %s404_s15 = smov 64   ;;  %s405_s16 = smov 4  }
   0xc   :  { %23 = dma.hbm_to_vmem [thread:$0]  %s453_s1, 1024, %s18_s13, [#allocation4], %s404_s15, %s404_s15, %s405_s16  }
   0xd   :  { %399 = dma.done.wait [#allocation4], 1024  }
   0xe   :  { %400 = vsyncadd [#allocation4], 4294966272  ;;  %v406_v0 = vmov 0.0   ;;  %vm407_vm0 = vmmov 0   ;;  %v343_v1 = vld [vmem:[#allocation3 + $0x38] sm:$0xff]   ;;  %v344_v2 = vld [vmem:[#allocation3 + $0x30] sm:$0xff]  }
   0xf   :  { %307 = vmatprep.subr.bf16.mxu0 %v406_v0  ;;  %323 = vmatprep.mubr.msk.bf16.mxu0 %vm407_vm0, %v406_v0  ;;  %v345_v3 = vld [vmem:[#allocation3 + $0x28] sm:$0xff]   ;;  %v346_v4 = vld [vmem:[#allocation3 + $0x20] sm:$0xff]   ;;  %v347_v5 = vld [vmem:[#allocation3 + $0x18] sm:$0xff]   ;;  %vm156_vm1 = vcmask 64512   ;;  %s408_s27 = smov [#allocation6]  }
  0x10   :  { %308 = vmatpush3.bf16.msra.mxu0 %v343_v1  ;;  %v348_v6 = vld [vmem:[#allocation3 + $0x10] sm:$0xff]   ;;  %v349_v7 = vld [vmem:[#allocation3 + $0x8] sm:$0xff]   ;;  %v350_v8 = vld [vmem:[#allocation3] sm:$0xff]   ;;  %s267_s28 = sshll.u32 %s408_s27, 4  ;;  %s268_s28 = int_to_ptr.vmem [resolvable:$true] %s267_s28 }
  0x11   :  { %309 = vmatprep.subr.bf16.mxu0 %v406_v0  ;;  %v40_v9 = vld [vmem:[%s452_s0] sm:$0xf]  ;;  %v152_v12 = vld [vmem:[%s454_s2 + $0x8] sm:$0xff]  ;;  %v153_v13 = vld [vmem:[%s454_s2 + $0x10] sm:$0xff]  ;;  %p384_p6 = scmp.lt.s32.totalorder %s268_s28, %s268_s28 }
  0x12   :  { %v151_v10 = vld [vmem:[%s454_s2] sm:$0xff]  ;;  %v154_v16 = vld [vmem:[%s454_s2 + $0x18] sm:$0xff]  ;;  %s379_s2 = scalar_lea.vmem %s268_s28, 512 }
  0x13   :  { %329 = vmatprep.mubr.msk.f32.mxu1 %vm156_vm1, %v151_v10  ;;  %p380_p5 = scmp.ne.s32.totalorder %s268_s28, %s379_s2  ;;  %p385_p7 = scmp.lt.s32.totalorder %s379_s2, %s379_s2 }
  0x14   :  { %310 = vmatpush3.bf16.msra.mxu0 %v344_v2 }
  0x15   :  { %311 = vmatprep.subr.bf16.mxu0 %v406_v0  ;;  %p386_p8 = por %p385_p7, %p384_p6 }
  0x17   :  { %p387_p9 = pnand %p386_p8, %p380_p5 }
  0x18   :  { %312 = vmatpush3.bf16.msra.mxu0 %v345_v3 }
  0x19   :  { %313 = vmatprep.subr.bf16.mxu0 %v406_v0 }
  0x1c   :  { %314 = vmatpush3.bf16.msra.mxu0 %v346_v4 }
  0x1d   :  { %315 = vmatprep.subr.bf16.mxu0 %v406_v0 }
  0x20   :  { %316 = vmatpush3.bf16.msra.mxu0 %v347_v5 }
  0x21   :  { %317 = vmatprep.subr.bf16.mxu0 %v406_v0 }
  0x24   :  { %318 = vmatpush3.bf16.msra.mxu0 %v348_v6 }
  0x25   :  { %319 = vmatprep.subr.bf16.mxu0 %v406_v0 }
  0x28   :  { %320 = vmatpush3.bf16.msra.mxu0 %v349_v7 }
  0x29   :  { %321 = vmatprep.subr.bf16.mxu0 %v406_v0 }
  0x2c   :  { %322 = vmatpush3.bf16.msra.mxu0 %v350_v8 }
  0x2f   :  { %324 = vmatmul.mubr.bf16.vlgmr.msra.gmra.mxu0 %v40_v9 }
  0xef   :  { %v140_v11 = vpop.f32.mrf.mxu0 }
  0xf0   :  { %327 = vmatprep.subr.mxu1 %v140_v11 }
  0xf1   :  { %v325_v14 = vpop.f32.mrf.mxu0  ;;  %328 = vmatpush3.msra.mxu1 %v140_v11 }
  0xf2   :  { %330 = vmatmul.mubr.msk.f32.vlgmr.msra.gmra.mxu1 %vm156_vm1, %v152_v12 }
  0xf3   :  { %v143_v15 = vpop.f32.mrf.mxu0  ;;  %332 = vmatprep.mubr.msk.f32.mxu1 %vm156_vm1, %v153_v13 }
  0xf5   :  { %v326_v17 = vpop.f32.mrf.mxu0 }
  0xf6   :  { %333 = vmatmul.mubr.msk.f32.gmra.mxu1 %vm156_vm1, %v154_v16 }
 0x1b2   :  { %v331_v18 = vpop.f32.mrf.mxu1 }
 0x1b3   :  { %351 = vtanh.f32 %v331_v18 }
 0x1b4   :  { %v235_v19 = vpop.f32.mrf.mxu1 }
 0x1b5   :  { %353 = vtanh.f32 %v235_v19 }
 0x1b6   :  { %v334_v20 = vpop.f32.mrf.mxu1 }
 0x1b7   :  { %355 = vtanh.f32 %v334_v20 }
 0x1b8   :  { %v245_v21 = vpop.f32.mrf.mxu1 }
 0x1b9   :  { %357 = vtanh.f32 %v245_v21 }
 0x1c0   :  { %v352_v22 = vpop.eup %351 }
 0x1c1   :  { %259 = vst [vmem:[#allocation6 + $0x8] sm:$0xff] %v352_v22 }
 0x1c2   :  { %v354_v23 = vpop.eup %353 }
 0x1c3   :  { %258 = vst [vmem:[#allocation6] sm:$0xff] %v354_v23 }
 0x1c4   :  { %v356_v24 = vpop.eup %355 }
 0x1c5   :  { %261 = vst [vmem:[#allocation6 + $0x18] sm:$0xff] %v356_v24 }
 0x1c6   :  { %v358_v25 = vpop.eup %357 }
 0x1c7   :  { %260 = vst [vmem:[#allocation6 + $0x10] sm:$0xff] %v358_v25 }
 0x1c8   :  { %390 = shalt.err (!%p387_p9)
}
 0x1c9   :  { %s409_s29 = smov 128   ;;  %s410_s30 = smov 8  }
 0x1ca   :  { %273 = dma.vmem_to_hbm [thread:$0]  %s268_s28, 512, %s455_s3, [#allocation5], %s409_s29, %s409_s29, %s410_s30  }
 0x1cb   :  { %401 = dma.done.wait [#allocation5], 512  }
 0x1cc   :  { %402 = vsyncadd [#allocation5], 4294966784 }
 0x1cd   :  { %277 = vsyncpa [#allocation4], 1 }
 0x1ce   :  { %278 = vsyncpa [#allocation5], 1 }

</bundles_post_ra>
